<compile_context>
chip_gen: v7x
topology: tpu7x:2x2x1
jax: 0.10.0
libtpu: 0.0.40
codegen_flags: <defaults>
</compile_context>

<pallas_src>
import numpy as np
import jax
import jax.numpy as jnp
from jax.experimental import pallas as pl
from jax.experimental.pallas import tpu as pltpu


def _round_up(x, m):
    return ((x + m - 1) // m) * m


def _cdiv(a, b):
    return (a + b - 1) // b


def _choose_batch_tile(B, block_b):
    """Pick the batch tile tb (rows per grid step).

    - As few steps as possible (per-step pipeline overhead ~0.35 us).
    - For B > 128: an even number of steps >= 2 so ("parallel",) splits the
      batch across v7x's two TensorCores, and tb % 128 == 0 so the lane-dense
      (2, tb) output block satisfies the (8, 128) tiling rule.
    - For B <= 128: a single step (tb == padded B), where the full-array
      exemption makes any multiple-of-8 tile legal.
    """
    steps = max(1, _cdiv(B, block_b))
    if steps == 1 and B > 128:
        steps = 2
    if steps == 1:
        return _round_up(max(B, 1), 8)
    if steps % 2:
        steps += 1
    return _round_up(_cdiv(B, steps), 128)


def _critic_kernel(x_ref, w1_ref, w2v_ref, out_ref):
    x = x_ref[...]                              # [TB, num_inputs] f32
    w1 = w1_ref[...]                            # [num_inputs, 2H] f32
    w2v = w2v_ref[...]                          # [2H + 5, 2H]     f32

    two_h = w2v.shape[1]                        # 2H
    h = two_h // 2                              # H

    w2 = w2v[0:two_h, :]                        # block-diagonal [2H, 2H]
    b1 = w2v[two_h + 0:two_h + 1, :]            # [1, 2H]
    b2 = w2v[two_h + 1:two_h + 2, :]            # [1, 2H]
    w3 = w2v[two_h + 2:two_h + 3, :]            # [1, 2H]  (final-layer row)
    b3c = w2v[two_h + 3:two_h + 5, 0:1]         # [2, 1]   (final biases, lane 0)

    # Layer 1: single fused K=num_inputs dot for both heads.
    # bf16 MXU operands, f32 accumulation (see module header re: tolerance).
    z1 = jnp.dot(x.astype(jnp.bfloat16), w1.astype(jnp.bfloat16),
                 preferred_element_type=jnp.float32) + b1
    h1 = jnp.tanh(z1)                           # [TB, 2H] f32 (EUP)

    # Layer 2: block-diagonal W2 keeps the two heads independent.
    z2 = jnp.dot(h1.astype(jnp.bfloat16), w2.astype(jnp.bfloat16),
                 preferred_element_type=jnp.float32) + b2
    h2a = jnp.tanh(z2)                          # [TB, 2H] f32

    # Layer 3 stays off the MXU: VPU elementwise mul, one XLU transpose to the
    # lane-dense layout, cross-sublane reduce per head.
    hw = h2a * w3                               # [TB, 2H] f32 (VPU)
    hwT = hw.T                                  # [2H, TB]     (XLU)
    q1 = jnp.sum(hwT[:h, :], axis=0, keepdims=True)   # [1, TB]
    q2 = jnp.sum(hwT[h:, :], axis=0, keepdims=True)   # [1, TB]
    out_ref[...] = jnp.concatenate([q1, q2], axis=0) + b3c   # [2, TB] lane-dense


def mlp_critic_forward(obs, actions, packed_params, *, block_b=2048):
    """obs: [B, obs_dim], actions: [B, act_dim] -> (q1 [B, 1], q2 [B, 1])."""
    w1, w2v = packed_params
    B = obs.shape[0]
    num_inputs, h2 = w1.shape

    # Concat in the wrapper: num_inputs (=8) is one f32 sublane tile, so this
    # costs nothing extra in HBM traffic and lets layer 1 be a single K=8 dot.
    x = jnp.concatenate([obs, actions], axis=1).astype(jnp.float32)

    tb = _choose_batch_tile(B, block_b)
    b_pad = _round_up(B, tb)
    if b_pad != B:
        x = jnp.pad(x, ((0, b_pad - B), (0, 0)))
    grid = (b_pad // tb,)

    out = pl.pallas_call(
        _critic_kernel,
        out_shape=jax.ShapeDtypeStruct((2, b_pad), jnp.float32),
        grid_spec=pltpu.PrefetchScalarGridSpec(
            num_scalar_prefetch=0,
            grid=grid,
            in_specs=[
                pl.BlockSpec((tb, num_inputs), lambda i: (i, 0)),
                # Packed weights: whole array, constant block index -> fetched
                # once and VMEM-resident across all batch tiles.
                pl.BlockSpec((num_inputs, h2), lambda i: (0, 0)),
                pl.BlockSpec((h2 + 5, h2), lambda i: (0, 0)),
            ],
            out_specs=pl.BlockSpec((2, tb), lambda i: (0, i)),
        ),
        compiler_params=pltpu.CompilerParams(
            dimension_semantics=("parallel",)),
    )(x, w1, w2v)

    q = out[:, :B]                         # [2, B]
    return q[0:1, :].T, q[1:2, :].T        # (q1 [B, 1], q2 [B, 1])


def init_mlp_critic_params(key, obs_dim, act_dim, hidden):
    """Per-branch params matching the PyTorch module:
    Linear(num_inputs, hidden), Linear(hidden, hidden), Linear(hidden, 1),
    orthogonal(gain=sqrt(2)) weights, zero biases.  Stored transposed [in, out]."""
    num_inputs = obs_dim + act_dim
    ortho = jax.nn.initializers.orthogonal(scale=float(np.sqrt(2.0)))
    keys = jax.random.split(key, 6)

    def linear(k, d_in, d_out):
        w_t = ortho(k, (d_in, d_out), jnp.float32)   # torch weight.T
        b = jnp.zeros((1, d_out), jnp.float32)
        return w_t, b

    w1a, b1a = linear(keys[0], num_inputs, hidden)
    w2a, b2a = linear(keys[1], hidden, hidden)
    w3a, b3a = linear(keys[2], hidden, 1)
    w1b, b1b = linear(keys[3], num_inputs, hidden)
    w2b, b2b = linear(keys[4], hidden, hidden)
    w3b, b3b = linear(keys[5], hidden, 1)
    return (w1a, b1a, w2a, b2a, w3a, b3a,
            w1b, b1b, w2b, b2b, w3b, b3b)


def pack_mlp_critic_params(params):
    """Fuse the two heads into 2 kernel operands:
       w1_packed  : [num_inputs, 2H]   (cols 0:H head-1, H:2H head-2)
       w2v_packed : [2H + 5, 2H]       rows 0:2H    block-diag W2
                                       row  2H      b1 (fused)
                                       row  2H+1    b2 (fused)
                                       row  2H+2    W3 row (fused)
                                       rows 2H+3:2H+5  b3 of each head in lane 0."""
    (w1a, b1a, w2a, b2a, w3a, b3a,
     w1b, b1b, w2b, b2b, w3b, b3b) = params
    hidden = w1a.shape[1]

    w1 = jnp.concatenate([w1a, w1b], axis=1)                     # [num_inputs, 2H]

    zeros = jnp.zeros((hidden, hidden), jnp.float32)
    w2 = jnp.concatenate(
        [jnp.concatenate([w2a, zeros], axis=1),
         jnp.concatenate([zeros, w2b], axis=1)], axis=0)         # [2H, 2H]

    b1 = jnp.concatenate([b1a, b1b], axis=1)                     # [1, 2H]
    b2 = jnp.concatenate([b2a, b2b], axis=1)                     # [1, 2H]
    w3row = jnp.concatenate([w3a.T, w3b.T], axis=1)              # [1, 2H]

    b3rows = jnp.zeros((2, 2 * hidden), jnp.float32)
    b3rows = b3rows.at[0, 0].set(b3a[0, 0]).at[1, 0].set(b3b[0, 0])

    w2v = jnp.concatenate([w2, b1, b2, w3row, b3rows], axis=0)   # [2H + 5, 2H]
    return w1, w2v


def reference_forward(obs, actions, params):
    """Plain-JAX reference mirroring the PyTorch forward (unfused, f32)."""
    (w1a, b1a, w2a, b2a, w3a, b3a,
     w1b, b1b, w2b, b2b, w3b, b3b) = params
    x = jnp.concatenate([obs, actions], axis=1)

    def branch(w1, b1, w2, b2, w3, b3):
        h = jnp.tanh(x @ w1 + b1)
        h = jnp.tanh(h @ w2 + b2)
        return h @ w3 + b3

    return (branch(w1a, b1a, w2a, b2a, w3a, b3a),
            branch(w1b, b1b, w2b, b2b, w3b, b3b))


if __name__ == "__main__":
    obs_dim, act_dim, hidden, batch = 6, 2, 32, 8

    key = jax.random.PRNGKey(0)
    k_obs, k_act, k_params = jax.random.split(key, 3)
    obs = jax.random.normal(k_obs, (batch, obs_dim), jnp.float32)
    actions = jax.random.normal(k_act, (batch, act_dim), jnp.float32)

    params = init_mlp_critic_params(k_params, obs_dim, act_dim, hidden)
    packed = pack_mlp_critic_params(params)

    q1, q2 = jax.jit(mlp_critic_forward)(obs, actions, packed)
    jax.block_until_ready((q1, q2))

    r1, r2 = reference_forward(obs, actions, params)
    assert q1.shape == (batch, 1) and q2.shape == (batch, 1)
    # Tolerance loosened from 1e-5: the kernel uses bf16 MXU operands with
    # f32 accumulation (per the perf review), which carries ~1e-2-scale error.
    np.testing.assert_allclose(np.asarray(q1), np.asarray(r1), rtol=2e-2, atol=3e-2)
    np.testing.assert_allclose(np.asarray(q2), np.asarray(r2), rtol=2e-2, atol=3e-2)

    print("KERNEL_OK")
</pallas_src>

<mosaic_0001>
module attributes {stable_mosaic.version = 11 : i64} {
  func.func @_critic_kernel(%arg0: i32, %arg1: memref<8x8xf32, #tpu.memory_space<vmem>>, %arg2: memref<8x64xf32, #tpu.memory_space<vmem>>, %arg3: memref<69x64xf32, #tpu.memory_space<vmem>>, %arg4: memref<2x8xf32, #tpu.memory_space<vmem>>) attributes {dimension_semantics = [#tpu.dimension_semantics<parallel>], iteration_bounds = array<i64: 1>, scalar_prefetch = 0 : i64, scratch_operands = 0 : i64, tpu.core_type = #tpu.core_type<tc>, window_params = [{transform_indices = @transform_0, window_bounds = array<i64: 8, 8>}, {pipeline_mode = #tpu.pipeline_mode<synchronous>, transform_indices = @transform_1, window_bounds = array<i64: 8, 64>}, {pipeline_mode = #tpu.pipeline_mode<synchronous>, transform_indices = @transform_2, window_bounds = array<i64: 69, 64>}, {transform_indices = @transform_3, window_bounds = array<i64: 2, 8>}]} {
    %c0 = arith.constant 0 : index
    %c0_0 = arith.constant 0 : index
    %0 = vector.load %arg1[%c0, %c0_0] : memref<8x8xf32, #tpu.memory_space<vmem>>, vector<8x8xf32>
    %c0_1 = arith.constant 0 : index
    %c0_2 = arith.constant 0 : index
    %1 = vector.load %arg2[%c0_1, %c0_2] : memref<8x64xf32, #tpu.memory_space<vmem>>, vector<8x64xf32>
    %c0_3 = arith.constant 0 : index
    %c0_4 = arith.constant 0 : index
    %2 = vector.load %arg3[%c0_3, %c0_4] : memref<69x64xf32, #tpu.memory_space<vmem>>, vector<69x64xf32>
    %3 = vector.extract_strided_slice %2 {offsets = [0, 0], sizes = [64, 64], strides = [1, 1]} : vector<69x64xf32> to vector<64x64xf32>
    %4 = vector.extract_strided_slice %2 {offsets = [64, 0], sizes = [1, 64], strides = [1, 1]} : vector<69x64xf32> to vector<1x64xf32>
    %5 = vector.extract_strided_slice %2 {offsets = [65, 0], sizes = [1, 64], strides = [1, 1]} : vector<69x64xf32> to vector<1x64xf32>
    %6 = vector.extract_strided_slice %2 {offsets = [66, 0], sizes = [1, 64], strides = [1, 1]} : vector<69x64xf32> to vector<1x64xf32>
    %7 = vector.extract_strided_slice %2 {offsets = [67, 0], sizes = [2, 1], strides = [1, 1]} : vector<69x64xf32> to vector<2x1xf32>
    %8 = arith.truncf %0 : vector<8x8xf32> to vector<8x8xbf16>
    %9 = arith.truncf %1 : vector<8x64xf32> to vector<8x64xbf16>
    %cst = arith.constant dense<0.000000e+00> : vector<8x64xf32>
    %10 = tpu.matmul %8, %9, %cst {dimension_numbers = #tpu.dot_dimension_numbers<[1], [0], [0], [1], [0, 0, 1, 1], [], []>} : vector<8x8xbf16>, vector<8x64xbf16>, vector<8x64xf32> -> vector<8x64xf32>
    %11 = vector.broadcast %4 : vector<1x64xf32> to vector<8x64xf32>
    %12 = arith.addf %10, %11 : vector<8x64xf32>
    %13 = math.tanh %12 : vector<8x64xf32>
    %14 = arith.truncf %13 : vector<8x64xf32> to vector<8x64xbf16>
    %15 = arith.truncf %3 : vector<64x64xf32> to vector<64x64xbf16>
    %cst_5 = arith.constant dense<0.000000e+00> : vector<8x64xf32>
    %16 = tpu.matmul %14, %15, %cst_5 {dimension_numbers = #tpu.dot_dimension_numbers<[1], [0], [0], [1], [0, 0, 1, 1], [], []>} : vector<8x64xbf16>, vector<64x64xbf16>, vector<8x64xf32> -> vector<8x64xf32>
    %17 = vector.broadcast %5 : vector<1x64xf32> to vector<8x64xf32>
    %18 = arith.addf %16, %17 : vector<8x64xf32>
    %19 = math.tanh %18 : vector<8x64xf32>
    %20 = vector.broadcast %6 : vector<1x64xf32> to vector<8x64xf32>
    %21 = arith.mulf %19, %20 : vector<8x64xf32>
    %22 = tpu.transpose %21, [1, 0] : vector<8x64xf32> -> vector<64x8xf32>
    %23 = vector.extract_strided_slice %22 {offsets = [0, 0], sizes = [32, 8], strides = [1, 1]} : vector<64x8xf32> to vector<32x8xf32>
    %cst_6 = arith.constant dense<0.000000e+00> : vector<8xf32>
    %24 = vector.multi_reduction <add>, %23, %cst_6 [0] : vector<32x8xf32> to vector<8xf32>
    %25 = vector.shape_cast %24 : vector<8xf32> to vector<1x8xf32>
    %26 = vector.extract_strided_slice %22 {offsets = [32, 0], sizes = [32, 8], strides = [1, 1]} : vector<64x8xf32> to vector<32x8xf32>
    %cst_7 = arith.constant dense<0.000000e+00> : vector<8xf32>
    %27 = vector.multi_reduction <add>, %26, %cst_7 [0] : vector<32x8xf32> to vector<8xf32>
    %28 = vector.shape_cast %27 : vector<8xf32> to vector<1x8xf32>
    %29 = tpu.concatenate %25, %28 in 0 : vector<1x8xf32>, vector<1x8xf32> -> vector<2x8xf32>
    %30 = vector.broadcast %7 : vector<2x1xf32> to vector<2x8xf32>
    %31 = arith.addf %29, %30 : vector<2x8xf32>
    %c0_8 = arith.constant 0 : index
    %c0_9 = arith.constant 0 : index
    %32 = vector.load %arg4[%c0_8, %c0_9] : memref<2x8xf32, #tpu.memory_space<vmem>>, vector<2x8xf32>
    tpu.vector_store %arg4[%c0_8, %c0_9], %31 {strides = array<i32>} : memref<2x8xf32, #tpu.memory_space<vmem>>, vector<2x8xf32>,
    return
  }
  func.func @transform_0(%arg0: i32) -> (i32, i32) {
    %c0_i32 = arith.constant 0 : i32
    %c0_i32_0 = arith.constant 0 : i32
    return %arg0, %c0_i32 : i32, i32
  }
  func.func @transform_1(%arg0: i32) -> (i32, i32) {
    %c0_i32 = arith.constant 0 : i32
    %c0_i32_0 = arith.constant 0 : i32
    %c0_i32_1 = arith.constant 0 : i32
    return %c0_i32, %c0_i32_0 : i32, i32
  }
  func.func @transform_2(%arg0: i32) -> (i32, i32) {
    %c0_i32 = arith.constant 0 : i32
    %c0_i32_0 = arith.constant 0 : i32
    %c0_i32_1 = arith.constant 0 : i32
    return %c0_i32, %c0_i32_0 : i32, i32
  }
  func.func @transform_3(%arg0: i32) -> (i32, i32) {
    %c0_i32 = arith.constant 0 : i32
    %c0_i32_0 = arith.constant 0 : i32
    return %c0_i32, %arg0 : i32, i32
  }
}

</mosaic_0001>

<bundles_post_ra>
// kernel: mlp_critic_forward.1
= control target key start
LH: loop header
LB: loop body
LE: loop exit
PB: predicated region body
PF: predicated region fallthrough
CT: control target
= control target key end

     0   :  { %v248_v0 = vmov 0.0   ;;  %vm36_vm0 = vcmask 1043456   ;;  %vm249_vm1 = vmmov 0   ;;  %vm32_vm2 = vcmask 64512   ;;  %s316_s1 = inlined_call_operand.vmem [shape: f32[8,64], index: 1, kind: input, shape index: {}]   ;;  %s317_s0 = inlined_call_operand.vmem [shape: f32[8,8], index: 0, kind: input, shape index: {}]   ;;  %s318_s2 = inlined_call_operand.vmem [shape: f32[69,64], index: 2, kind: input, shape index: {}]   ;;  %s319_s3 = inlined_call_operand.vmem [shape: f32[2,8], index: 3, kind: output, shape index: {}]  }
   0x1   :  { %222 = vmatprep.subr.bf16.mxu0 %v248_v0  ;;  %v16_v1 = vld [vmem:[%s316_s1] sm:$0xff]  ;;  %224 = vmatprep.mubr.msk.bf16.mxu0 %vm249_vm1, %v248_v0  ;;  %v18_v7 = vld [vmem:[%s318_s2 + $0x8] sm:$0xff]  ;;  %v19_v9 = vld [vmem:[%s318_s2 + $0x10] sm:$0xff]  ;;  %v250_v19 = vmov 0   ;;  %v28_v20 = vlaneseq  ;;  %vm90_vm3 = vcmask 523264   ;;  %vm198_vm4 = vcmask 1040384  }
   0x2   :  { %v15_v2 = vld [vmem:[%s317_s0] sm:$0xff]  ;;  %v27_v3 = vpack.c.bf16 %v16_v1, %v16_v1  ;;  %228 = vmatprep.subr.bf16.mxu1 %v248_v0  ;;  %236 = vmatprep.mubr.msk.bf16.mxu1 %vm249_vm1, %v248_v0  ;;  %v20_v10 = vld [vmem:[%s318_s2 + $0x18] sm:$0xff]  ;;  %v22_v13 = vld [vmem:[%s318_s2 + $0x28] sm:$0xff]  ;;  %vm207_vm5 = vcmask 58368  }
   0x3   :  { %v26_v5 = vpack.c.bf16 %v15_v2, %v15_v2  ;;  %v17_v6 = vld [vmem:[%s318_s2] sm:$0xff]  ;;  %v83_v11 = vpack.c.bf16 %v20_v10, %v19_v9  ;;  %v23_v15 = vld [vmem:[%s318_s2 + $0x30] sm:$0xff]  ;;  %v24_v16 = vld [vmem:[%s318_s2 + $0x38] sm:$0xff]  ;;  %243 = vset.pattern.permute.xlu0 %v250_v19  ;;  %v29_v21 = vshrl.u32 %v28_v20, 7 }
   0x4   :  { %v38_v4 = vsel %vm36_vm0, %v27_v3, 0  ;;  %v82_v8 = vpack.c.bf16 %v18_v7, %v17_v6  ;;  %v21_v12 = vld [vmem:[%s318_s2 + $0x20] sm:$0xff]  ;;  %v85_v17 = vpack.c.bf16 %v24_v16, %v23_v15 }
   0x5   :  { %223 = vmatpush3.bf16.msra.mxu0 %v38_v4  ;;  %v84_v14 = vpack.c.bf16 %v22_v13, %v21_v12  ;;  %v25_v18 = vld [vmem:[%s318_s2 + $0x40] sm:$0x1f]  ;;  %v30_v22 = vsub.s32 0, %v29_v21  ;;  %v88_v31 = vsub.s32 1, %v29_v21  ;;  %v137_v38 = vsub.s32 2, %v29_v21 }
   0x6   :  { %229 = vmatpush3.bf16.msra.mxu1 %v82_v8  ;;  %202 = vperm.xlu0 %243, %v25_v18  }
   0x7   :  { %230 = vmatprep.subr.bf16.mxu1 %v248_v0  ;;  %v31_v23 = vrot.slane %v25_v18, %v30_v22  ;;  %v89_v32 = vrot.slane %v25_v18, %v88_v31  ;;  %v138_v39 = vrot.slane %v25_v18, %v137_v38 }
   0x8   :  { %225 = vmatmul.mubr.msk.bf16.vlgmr.msra.gmra.mrb[0].mxu0 %vm32_vm2, %v26_v5 }
   0xa   :  { %231 = vmatpush3.bf16.msra.mxu1 %v83_v11 }
   0xb   :  { %232 = vmatprep.subr.bf16.mxu1 %v248_v0 }
   0xe   :  { %233 = vmatpush3.bf16.msra.mxu1 %v84_v14 }
   0xf   :  { %234 = vmatprep.subr.bf16.mxu1 %v248_v0 }
  0x12   :  { %235 = vmatpush3.bf16.msra.mxu1 %v85_v17 }
  0x85   :  { %v203_v42 = vpop.permute.xlu0 %202 }
  0x86   :  { %v204_v13 = vrot.slane %v203_v42, 3 }
  0xdb   :  { %v74_v24 = vpop.f32.mrb[0].mxu0 }
  0xdc   :  { %v75_v25 = vadd.f32 %v74_v24, %v31_v23  ;;  %v226_v26 = vpop.f32.mrb[1].mxu0 }
  0xdd   :  { %v77_v27 = vpop.f32.mrb[2].mxu0 }
  0xde   :  { %244 = vtanh.f32 %v75_v25  ;;  %v227_v28 = vpop.f32.mrb[3].mxu0 }
  0xe8   :  { %v245_v29 = vpop.eup %244 }
  0xe9   :  { %v81_v30 = vpack.c.bf16 %v245_v29, %v245_v29 }
  0xeb   :  { %237 = vmatmul.mubr.msk.bf16.vlgmr.msra.gmra.mrb[0].mxu1 %vm90_vm3, %v81_v30 }
 0x1be   :  { %v128_v33 = vpop.f32.mrb[0].mxu1 }
 0x1bf   :  { %v129_v34 = vadd.f32 %v128_v33, %v89_v32  ;;  %v238_v35 = vpop.f32.mrb[1].mxu1 }
 0x1c0   :  { %v131_v36 = vpop.f32.mrb[2].mxu1 }
 0x1c1   :  { %246 = vtanh.f32 %v129_v34  ;;  %v239_v37 = vpop.f32.mrb[3].mxu1 }
 0x1cb   :  { %v247_v40 = vpop.eup %246 }
 0x1cc   :  { %v139_v41 = vmul.f32 %v247_v40, %v138_v39 }
 0x1ce   :  { %140 = vxpose.xlu0.b32.start.end [1/1] (short) (narrow) %v139_v41, 64 }
 0x24e   :  { %v156_v43 = vpop.trf.xlu0 }
 0x24f   :  { %v172_v48 = vsel %vm32_vm2, %v156_v43, 0.0 }
 0x252   :  { %v157_v44 = vpop.trf.xlu0 }
 0x253   :  { %v173_v46 = vsel %vm32_vm2, %v157_v44, 0.0 }
 0x254   :  { %v174_v50 = vadd.f32 %v173_v46, %v172_v48 }
 0x256   :  { %v158_v45 = vpop.trf.xlu0 }
 0x257   :  { %v175_v49 = vsel %vm32_vm2, %v158_v45, 0.0 }
 0x258   :  { %v176_v52 = vadd.f32 %v175_v49, %v174_v50 }
 0x25a   :  { %v159_v47 = vpop.trf.xlu0 }
 0x25b   :  { %v177_v51 = vsel %vm32_vm2, %v159_v47, 0.0 }
 0x25c   :  { %v178_v54 = vadd.f32 %v177_v51, %v176_v52 }
 0x25e   :  { %v160_v53 = vpop.trf.xlu0  ;;  %v179_v56 = vrot.slane %v178_v54, 4 }
 0x25f   :  { %v185_v59 = vsel %vm32_vm2, %v160_v53, 0.0 }
 0x260   :  { %v180_v61 = vadd.f32 %v179_v56, %v178_v54 }
 0x262   :  { %v161_v55 = vpop.trf.xlu0  ;;  %v181_v2 = vrot.slane %v180_v61, 2 }
 0x263   :  { %v186_v57 = vsel %vm32_vm2, %v161_v55, 0.0 }
 0x264   :  { %v187_v62 = vadd.f32 %v186_v57, %v185_v59  ;;  %v182_v5 = vadd.f32 %v181_v2, %v180_v61 }
 0x266   :  { %v162_v58 = vpop.trf.xlu0  ;;  %v183_v8 = vrot.slane %v182_v5, 1 }
 0x267   :  { %v188_v60 = vsel %vm32_vm2, %v162_v58, 0.0 }
 0x268   :  { %v189_v63 = vadd.f32 %v188_v60, %v187_v62  ;;  %v184_v11 = vadd.f32 %v183_v8, %v182_v5 }
 0x26a   :  { %v163_v0 = vpop.trf.xlu0 }
 0x26b   :  { %v190_v1 = vsel %vm32_vm2, %v163_v0, 0.0 }
 0x26c   :  { %v191_v3 = vadd.f32 %v190_v1, %v189_v63 }
 0x26e   :  { %v192_v4 = vrot.slane %v191_v3, 4 }
 0x270   :  { %v193_v6 = vadd.f32 %v192_v4, %v191_v3 }
 0x272   :  { %v194_v7 = vrot.slane %v193_v6, 2 }
 0x274   :  { %v195_v9 = vadd.f32 %v194_v7, %v193_v6 }
 0x276   :  { %v196_v10 = vrot.slane %v195_v9, 1 }
 0x278   :  { %v197_v12 = vadd.f32 %v196_v10, %v195_v9 }
 0x27a   :  { %v199_v14 = vsel %vm198_vm4, %v184_v11, %v197_v12 }
 0x27b   :  { %v206_v15 = vadd.f32 %v204_v13, %v199_v14 }
 0x27d   :  { %208 = vst.msk [vmem:[%s319_s3] sm:$0x3] %vm207_vm5, %v206_v15 }

</bundles_post_ra>
